<compile_context>
chip_gen: v7x
topology: tpu7x:2x2x1
jax: 0.10.0
libtpu: 0.0.40
codegen_flags: <defaults>
</compile_context>

<pallas_src>
import functools

import jax
import jax.numpy as jnp
from jax.experimental import pallas as pl
from jax.experimental.pallas import tpu as pltpu


# ---------------------------------------------------------------------------
# Chip-aware sizing helpers
# ---------------------------------------------------------------------------
def _vmem_capacity_bytes():
    try:
        return int(pltpu.get_tpu_info().vmem_capacity_bytes)
    except Exception:
        return 64 * 1024 * 1024  # conservative (v7x-sized) default


def _compiler_params(semantics, vmem_cap):
    # <= 48 MiB on v7x (64 MiB VMEM), 64 MiB on v5e/v6e (128 MiB VMEM).
    return pltpu.CompilerParams(
        dimension_semantics=semantics,
        vmem_limit_bytes=int(min((vmem_cap * 3) // 4, 64 * 1024 * 1024)),
    )


def _fused_plan(B, C, HW, Cmid, in_bytes, out_bytes, budget):
    """Largest batch-block whose resident (x in + new out) blocks fit the budget."""
    # Single-shot conv when the f32 intermediate is small; otherwise chunk spatially.
    chunk = HW if (Cmid * HW * 4) <= (4 << 20) else 8192
    per_batch = 2 * C * HW * (in_bytes + out_bytes) + 2 * Cmid * chunk * 4
    max_bb = max(1, B // 2)  # >=2 grid steps -> both v7x TensorCores participate
    for bb in range(max_bb, 0, -1):
        if B % bb == 0 and bb * per_batch <= budget:
            return bb, chunk
    return None, chunk


def _two_pass_plan(B, C, HW, Cmid, in_bytes, out_bytes, budget, max_tile=None):
    """Tiling for the large-image fallback (Bb=1)."""
    hw128 = pl.cdiv(HW, 128) * 128
    cap = 32768 if max_tile is None else max(128, (max_tile // 128) * 128)
    per_lane = 2 * C * in_bytes + 2 * Cmid * 4  # x (dbl-buffered) + acc + conv tile
    t = min(hw128, cap, max(128, (budget // per_lane) // 128 * 128))
    t = max(128, (t // 128) * 128)
    BC = B * C
    if BC <= 8:
        rows = BC                                   # full dim -> no sublane constraint
    else:
        per_row = 2 * t * (in_bytes + out_bytes)
        rows = max(8, min((BC // 8) * 8, ((budget // per_row) // 8) * 8))
    return t, rows


# ---------------------------------------------------------------------------
# Kernels
# ---------------------------------------------------------------------------
def _channel_mix(xs, w1, b1, use_mxu, C):
    """ReLU(w1 @ x + b1) over the channel axis for a (Bb, C, T) slab."""
    if use_mxu:
        h = jnp.einsum("mc,bct->bmt", w1, xs, preferred_element_type=jnp.float32)
    else:
        # VPU broadcast-MAC: with tiny C, an MXU tile would be >95% padding.
        h = w1[:, 0:1][None, :, :] * xs[:, 0:1, :]
        for c in range(1, C):
            h = h + w1[:, c:c + 1][None, :, :] * xs[:, c:c + 1, :]
    return jnp.maximum(h + b1[None, :, :], 0.0)


def _softmax_importance(pooled, w2t, b2):
    """(Bb, Cmid, 1) pooled features -> (Bb, C) softmax importance."""
    logits = jnp.sum(w2t[None, :, :] * pooled, axis=1) + b2      # (Bb, C)
    m = jnp.max(logits, axis=-1, keepdims=True)
    e = jnp.exp(logits - m)
    return e * pl.reciprocal(jnp.sum(e, axis=-1, keepdims=True))  # off hot path


def _fused_kernel(x_ref, w1_ref, b1_ref, w2t_ref, b2_ref, new_ref, imp_ref,
                  *, chunk, use_mxu):
    """x block resident in VMEM: extract (pool+softmax) then emphasize in one pass."""
    Bb, C, HW = x_ref.shape
    Cmid = w1_ref.shape[0]
    w1 = w1_ref[...]                               # (Cmid, C)
    b1 = b1_ref[...]                               # (Cmid, 1)

    # --- extract: pooled ReLU(conv1x1(x)) over the full resident spatial axis ---
    pooled_sum = jnp.zeros((Bb, Cmid, 1), jnp.float32)
    for c0 in range(0, HW, chunk):
        cs = min(chunk, HW - c0)
        xs = x_ref[:, :, pl.ds(c0, cs)].astype(jnp.float32)      # (Bb, C, cs)
        h = _channel_mix(xs, w1, b1, use_mxu, C)
        pooled_sum = pooled_sum + jnp.sum(h, axis=-1, keepdims=True)
    pooled = pooled_sum * (1.0 / HW)               # true divisor; no padding exists

    # --- FC + softmax over channels ---
    imp = _softmax_importance(pooled, w2t_ref[...], b2_ref[...])  # (Bb, C)
    imp_ref[...] = imp[:, None, :]                 # (Bb, 1, C), lane-dense store

    # --- emphasize: channel-wise reweight from the SAME resident x block ---
    imp_col = imp[:, :, None]                      # (Bb, C, 1)
    for c0 in range(0, HW, chunk):
        cs = min(chunk, HW - c0)
        xs = x_ref[:, :, pl.ds(c0, cs)].astype(jnp.float32)
        new_ref[:, :, pl.ds(c0, cs)] = (xs * imp_col).astype(new_ref.dtype)


def _extract_kernel(x_ref, w1_ref, b1_ref, w2t_ref, b2_ref, imp_ref, acc_ref,
                    *, HW, T_hw, use_mxu):
    """Fallback pass 1: spatial-tiled pooled ReLU(conv1x1(x)); softmax at last tile."""
    s = pl.program_id(1)
    C = x_ref.shape[1]

    @pl.when(s == 0)
    def _():
        acc_ref[...] = jnp.zeros_like(acc_ref)

    x = x_ref[...].astype(jnp.float32)             # (1, C, T_hw)
    h = _channel_mix(x, w1_ref[...], b1_ref[...], use_mxu, C)

    if HW % T_hw != 0:
        # Ragged last tile: mask garbage lanes (ReLU(bias)/stale data) out of the sum.
        lane = jax.lax.broadcasted_iota(jnp.int32, h.shape, 2)
        h = jnp.where(s * T_hw + lane < HW, h, 0.0)

    # Lane-parallel partial sums (pure VPU adds); single cross-lane reduce at the end.
    acc_ref[...] += h

    @pl.when(s == pl.num_programs(1) - 1)
    def _():
        pooled = jnp.sum(acc_ref[...], axis=-1, keepdims=True) * (1.0 / HW)
        imp = _softmax_importance(pooled, w2t_ref[...], b2_ref[...])   # (1, C)
        imp_ref[...] = imp[:, None, :]                                 # (1, 1, C)


def _emphasize_kernel(x_ref, imp_ref, new_ref):
    """Fallback pass 2: new = x * importance on a dense (rows, lanes) 2D view."""
    new_ref[...] = (x_ref[...].astype(jnp.float32) * imp_ref[...]).astype(new_ref.dtype)


# ---------------------------------------------------------------------------
# Wrapper
# ---------------------------------------------------------------------------
def eecp_forward(x, w1, b1, w2, b2, *, out_dtype=None,
                 force_two_pass=False, max_spatial_tile=None):
    """x: (B, C, H, W).  Returns (new: (B, C, H, W) out_dtype, importance: (B, C) f32).

    Set out_dtype=jnp.bfloat16 (and/or pass bf16 x) to halve HBM traffic if the
    consumer tolerates it; pooling/softmax math stays f32 in-kernel regardless.
    """
    B, C, H, W = x.shape
    HW = H * W
    Cmid = w1.shape[0]
    out_dtype = x.dtype if out_dtype is None else out_dtype
    in_bytes = jnp.dtype(x.dtype).itemsize
    out_bytes = jnp.dtype(out_dtype).itemsize

    vmem_cap = _vmem_capacity_bytes()
    budget = (vmem_cap * 3) // 8          # ~24 MiB on v7x, ~48 MiB on v5e/v6e

    x_flat = x.reshape(B, C, HW)          # contiguous -> free reshape, no copy
    w2t = w2.T                            # (Cmid, C)   FC weight lane-dense in C
    b2_row = b2.reshape(1, C)             # (1, C)      lane-dense bias
    # VPU broadcast-MAC for small channel mixes; MXU once C*Cmid is non-trivial.
    use_mxu = (C * Cmid > 256)

    bb, chunk = (None, None) if force_two_pass else _fused_plan(
        B, C, HW, Cmid, in_bytes, out_bytes, budget)

    if bb is not None:
        # ---- fused single pass: 1 read + 1 write of x ----
        nB = B // bb
        fused = functools.partial(_fused_kernel, chunk=chunk, use_mxu=use_mxu)
        new_flat, imp3 = pl.pallas_call(
            fused,
            out_shape=(jax.ShapeDtypeStruct((B, C, HW), out_dtype),
                       jax.ShapeDtypeStruct((B, 1, C), jnp.float32)),
            grid=(nB,),
            in_specs=[
                pl.BlockSpec((bb, C, HW), lambda b: (b, 0, 0)),
                pl.BlockSpec((Cmid, C), lambda b: (0, 0)),
                pl.BlockSpec((Cmid, 1), lambda b: (0, 0)),
                pl.BlockSpec((Cmid, C), lambda b: (0, 0)),
                pl.BlockSpec((1, C), lambda b: (0, 0)),
            ],
            out_specs=[
                pl.BlockSpec((bb, C, HW), lambda b: (b, 0, 0)),
                pl.BlockSpec((bb, 1, C), lambda b: (b, 0, 0)),
            ],
            compiler_params=_compiler_params(("parallel",), vmem_cap),
        )(x_flat, w1, b1, w2t, b2_row)
        return new_flat.reshape(B, C, H, W), imp3.reshape(B, C)

    # ---- fallback: image too large for a resident block -> tiled two-pass ----
    t_hw, rows = _two_pass_plan(B, C, HW, Cmid, in_bytes, out_bytes, budget,
                                max_tile=max_spatial_tile)
    nT = pl.cdiv(HW, t_hw)

    extract = functools.partial(_extract_kernel, HW=HW, T_hw=t_hw, use_mxu=use_mxu)
    imp3 = pl.pallas_call(
        extract,
        out_shape=jax.ShapeDtypeStruct((B, 1, C), jnp.float32),
        grid=(B, nT),
        in_specs=[
            pl.BlockSpec((1, C, t_hw), lambda b, s: (b, 0, s)),
            pl.BlockSpec((Cmid, C), lambda b, s: (0, 0)),
            pl.BlockSpec((Cmid, 1), lambda b, s: (0, 0)),
            pl.BlockSpec((Cmid, C), lambda b, s: (0, 0)),
            pl.BlockSpec((1, C), lambda b, s: (0, 0)),
        ],
        out_specs=pl.BlockSpec((1, 1, C), lambda b, s: (b, 0, 0)),
        scratch_shapes=[pltpu.VMEM((1, Cmid, t_hw), jnp.float32)],
        compiler_params=_compiler_params(("parallel", "arbitrary"), vmem_cap),
    )(x_flat, w1, b1, w2t, b2_row)

    imp = imp3.reshape(B, C)
    # Pass 2 on a dense 2D view (rows = batch*channel) so tiny C fills sublanes.
    x2 = x_flat.reshape(B * C, HW)            # contiguous -> free
    imp_rows = imp3.reshape(B * C, 1)         # contiguous -> free (no relayout op)
    nR = pl.cdiv(B * C, rows)
    new2 = pl.pallas_call(
        _emphasize_kernel,
        out_shape=jax.ShapeDtypeStruct((B * C, HW), out_dtype),
        grid=(nR, nT),
        in_specs=[
            pl.BlockSpec((rows, t_hw), lambda r, s: (r, s)),
            pl.BlockSpec((rows, 1), lambda r, s: (r, 0)),
        ],
        out_specs=pl.BlockSpec((rows, t_hw), lambda r, s: (r, s)),
        compiler_params=_compiler_params(("parallel", "parallel"), vmem_cap),
    )(x2, imp_rows)
    return new2.reshape(B, C, H, W), imp


# ---------------------------------------------------------------------------
# Pure-JAX reference
# ---------------------------------------------------------------------------
def eecp_reference(x, w1, b1, w2, b2):
    B, C, H, W = x.shape
    xf = x.reshape(B, C, H * W).astype(jnp.float32)
    h = jnp.maximum(jnp.einsum("mc,bcs->bms", w1, xf) + b1[None, :, :], 0.0)
    pooled = jnp.mean(h, axis=-1)                                   # (B, Cmid)
    logits = pooled @ w2.T + b2[:, 0][None, :]                      # (B, C)
    imp = jax.nn.softmax(logits, axis=-1)                           # (B, C)
    new = xf * imp[:, :, None]
    return new.reshape(B, C, H, W), imp


if __name__ == "__main__":
    B, C, H, W = 2, 4, 16, 16
    Cmid = 8

    key = jax.random.PRNGKey(0)
    kx, kw1, kb1, kw2, kb2 = jax.random.split(key, 5)

    x = jax.random.normal(kx, (B, C, H, W), dtype=jnp.float32)
    # Deterministic parameter init (synthetic; no checkpoint load).
    w1 = 0.1 * jax.random.normal(kw1, (Cmid, C), dtype=jnp.float32)
    b1 = 0.05 * jax.random.normal(kb1, (Cmid, 1), dtype=jnp.float32)
    w2 = 0.1 * jax.random.normal(kw2, (C, Cmid), dtype=jnp.float32)
    b2 = 0.05 * jax.random.normal(kb2, (C, 1), dtype=jnp.float32)

    # Main (fused single-pass) path.
    new, pattern_importance = eecp_forward(x, w1, b1, w2, b2)
    jax.block_until_ready((new, pattern_importance))
    new_ref, imp_ref = eecp_reference(x, w1, b1, w2, b2)
    assert new.shape == (B, C, H, W) and pattern_importance.shape == (B, C)
    assert jnp.allclose(new, new_ref, atol=1e-4, rtol=1e-4)
    assert jnp.allclose(pattern_importance, imp_ref, atol=1e-4, rtol=1e-4)

    # Exercise the large-image fallback: ragged spatial tiles (HW=324 not a multiple
    # of 128) with in-kernel masking and a multi-tile reduction, no out-of-kernel pad.
    H2 = W2 = 18
    x2 = jax.random.normal(kx, (B, C, H2, W2), dtype=jnp.float32)
    new2, imp2 = eecp_forward(x2, w1, b1, w2, b2,
                              force_two_pass=True, max_spatial_tile=128)
    jax.block_until_ready((new2, imp2))
    new2_ref, imp2_ref = eecp_reference(x2, w1, b1, w2, b2)
    assert jnp.allclose(new2, new2_ref, atol=1e-4, rtol=1e-4)
    assert jnp.allclose(imp2, imp2_ref, atol=1e-4, rtol=1e-4)

    print("KERNEL_OK")
</pallas_src>

<mosaic_0001>
module attributes {stable_mosaic.version = 11 : i64} {
  func.func @_fused_kernel(%arg0: i32, %arg1: memref<1x4x256xf32, #tpu.memory_space<vmem>>, %arg2: memref<8x4xf32, #tpu.memory_space<vmem>>, %arg3: memref<8x1xf32, #tpu.memory_space<vmem>>, %arg4: memref<8x4xf32, #tpu.memory_space<vmem>>, %arg5: memref<1x4xf32, #tpu.memory_space<vmem>>, %arg6: memref<1x4x256xf32, #tpu.memory_space<vmem>>, %arg7: memref<1x1x4xf32, #tpu.memory_space<vmem>>) attributes {dimension_semantics = [#tpu.dimension_semantics<parallel>], iteration_bounds = array<i64: 2>, scalar_prefetch = 0 : i64, scratch_operands = 0 : i64, tpu.core_type = #tpu.core_type<tc>, window_params = [{transform_indices = @transform_0, window_bounds = array<i64: 1, 4, 256>}, {pipeline_mode = #tpu.pipeline_mode<synchronous>, transform_indices = @transform_1, window_bounds = array<i64: 8, 4>}, {pipeline_mode = #tpu.pipeline_mode<synchronous>, transform_indices = @transform_2, window_bounds = array<i64: 8, 1>}, {pipeline_mode = #tpu.pipeline_mode<synchronous>, transform_indices = @transform_3, window_bounds = array<i64: 8, 4>}, {pipeline_mode = #tpu.pipeline_mode<synchronous>, transform_indices = @transform_4, window_bounds = array<i64: 1, 4>}, {transform_indices = @transform_5, window_bounds = array<i64: 1, 4, 256>}, {transform_indices = @transform_6, window_bounds = array<i64: 1, 1, 4>}]} {
    %c0 = arith.constant 0 : index
    %c0_0 = arith.constant 0 : index
    %0 = vector.load %arg2[%c0, %c0_0] : memref<8x4xf32, #tpu.memory_space<vmem>>, vector<8x4xf32>
    %c0_1 = arith.constant 0 : index
    %c0_2 = arith.constant 0 : index
    %1 = vector.load %arg3[%c0_1, %c0_2] : memref<8x1xf32, #tpu.memory_space<vmem>>, vector<8x1xf32>
    %cst = arith.constant 0.000000e+00 : f32
    %2 = vector.broadcast %cst : f32 to vector<1x8x1xf32>
    %c0_3 = arith.constant 0 : index
    %c0_4 = arith.constant 0 : index
    %c0_5 = arith.constant 0 : index
    %3 = vector.load %arg1[%c0_3, %c0_4, %c0_5] : memref<1x4x256xf32, #tpu.memory_space<vmem>>, vector<1x4x256xf32>
    %4 = vector.extract_strided_slice %0 {offsets = [0, 0], sizes = [8, 1], strides = [1, 1]} : vector<8x4xf32> to vector<8x1xf32>
    %5 = vector.shape_cast %4 : vector<8x1xf32> to vector<1x8x1xf32>
    %6 = vector.extract_strided_slice %3 {offsets = [0, 0, 0], sizes = [1, 1, 256], strides = [1, 1, 1]} : vector<1x4x256xf32> to vector<1x1x256xf32>
    %7 = vector.broadcast %5 : vector<1x8x1xf32> to vector<1x8x256xf32>
    %8 = vector.broadcast %6 : vector<1x1x256xf32> to vector<1x8x256xf32>
    %9 = arith.mulf %7, %8 : vector<1x8x256xf32>
    %10 = vector.extract_strided_slice %0 {offsets = [0, 1], sizes = [8, 1], strides = [1, 1]} : vector<8x4xf32> to vector<8x1xf32>
    %11 = vector.shape_cast %10 : vector<8x1xf32> to vector<1x8x1xf32>
    %12 = vector.extract_strided_slice %3 {offsets = [0, 1, 0], sizes = [1, 1, 256], strides = [1, 1, 1]} : vector<1x4x256xf32> to vector<1x1x256xf32>
    %13 = vector.broadcast %11 : vector<1x8x1xf32> to vector<1x8x256xf32>
    %14 = vector.broadcast %12 : vector<1x1x256xf32> to vector<1x8x256xf32>
    %15 = arith.mulf %13, %14 : vector<1x8x256xf32>
    %16 = arith.addf %9, %15 : vector<1x8x256xf32>
    %17 = vector.extract_strided_slice %0 {offsets = [0, 2], sizes = [8, 1], strides = [1, 1]} : vector<8x4xf32> to vector<8x1xf32>
    %18 = vector.shape_cast %17 : vector<8x1xf32> to vector<1x8x1xf32>
    %19 = vector.extract_strided_slice %3 {offsets = [0, 2, 0], sizes = [1, 1, 256], strides = [1, 1, 1]} : vector<1x4x256xf32> to vector<1x1x256xf32>
    %20 = vector.broadcast %18 : vector<1x8x1xf32> to vector<1x8x256xf32>
    %21 = vector.broadcast %19 : vector<1x1x256xf32> to vector<1x8x256xf32>
    %22 = arith.mulf %20, %21 : vector<1x8x256xf32>
    %23 = arith.addf %16, %22 : vector<1x8x256xf32>
    %24 = vector.extract_strided_slice %0 {offsets = [0, 3], sizes = [8, 1], strides = [1, 1]} : vector<8x4xf32> to vector<8x1xf32>
    %25 = vector.shape_cast %24 : vector<8x1xf32> to vector<1x8x1xf32>
    %26 = vector.extract_strided_slice %3 {offsets = [0, 3, 0], sizes = [1, 1, 256], strides = [1, 1, 1]} : vector<1x4x256xf32> to vector<1x1x256xf32>
    %27 = vector.broadcast %25 : vector<1x8x1xf32> to vector<1x8x256xf32>
    %28 = vector.broadcast %26 : vector<1x1x256xf32> to vector<1x8x256xf32>
    %29 = arith.mulf %27, %28 : vector<1x8x256xf32>
    %30 = arith.addf %23, %29 : vector<1x8x256xf32>
    %31 = vector.shape_cast %1 : vector<8x1xf32> to vector<1x8x1xf32>
    %32 = vector.broadcast %31 : vector<1x8x1xf32> to vector<1x8x256xf32>
    %33 = arith.addf %30, %32 : vector<1x8x256xf32>
    %cst_6 = arith.constant 0.000000e+00 : f32
    %34 = vector.broadcast %cst_6 : f32 to vector<1x8x256xf32>
    %35 = arith.maximumf %33, %34 : vector<1x8x256xf32>
    %cst_7 = arith.constant dense<0.000000e+00> : vector<1x8xf32>
    %36 = vector.multi_reduction <add>, %35, %cst_7 [2] : vector<1x8x256xf32> to vector<1x8xf32>
    %37 = vector.shape_cast %36 : vector<1x8xf32> to vector<1x8x1xf32>
    %38 = arith.addf %2, %37 : vector<1x8x1xf32>
    %cst_8 = arith.constant 3.906250e-03 : f32
    %39 = vector.broadcast %cst_8 : f32 to vector<1x8x1xf32>
    %40 = arith.mulf %38, %39 : vector<1x8x1xf32>
    %c0_9 = arith.constant 0 : index
    %c0_10 = arith.constant 0 : index
    %41 = vector.load %arg4[%c0_9, %c0_10] : memref<8x4xf32, #tpu.memory_space<vmem>>, vector<8x4xf32>
    %c0_11 = arith.constant 0 : index
    %c0_12 = arith.constant 0 : index
    %42 = vector.load %arg5[%c0_11, %c0_12] : memref<1x4xf32, #tpu.memory_space<vmem>>, vector<1x4xf32>
    %43 = vector.shape_cast %41 : vector<8x4xf32> to vector<1x8x4xf32>
    %44 = vector.broadcast %40 : vector<1x8x1xf32> to vector<1x8x4xf32>
    %45 = arith.mulf %43, %44 : vector<1x8x4xf32>
    %cst_13 = arith.constant dense<0.000000e+00> : vector<1x4xf32>
    %46 = vector.multi_reduction <add>, %45, %cst_13 [1] : vector<1x8x4xf32> to vector<1x4xf32>
    %47 = arith.addf %46, %42 : vector<1x4xf32>
    %cst_14 = arith.constant dense<0xFF800000> : vector<1xf32>
    %48 = vector.multi_reduction <maximumf>, %47, %cst_14 [1] : vector<1x4xf32> to vector<1xf32>
    %49 = vector.shape_cast %48 : vector<1xf32> to vector<1x1xf32>
    %50 = vector.broadcast %49 : vector<1x1xf32> to vector<1x4xf32>
    %51 = arith.subf %47, %50 : vector<1x4xf32>
    %52 = math.exp %51 : vector<1x4xf32>
    %cst_15 = arith.constant dense<0.000000e+00> : vector<1xf32>
    %53 = vector.multi_reduction <add>, %52, %cst_15 [1] : vector<1x4xf32> to vector<1xf32>
    %54 = vector.shape_cast %53 : vector<1xf32> to vector<1x1xf32>
    %55 = tpu.reciprocal %54 : vector<1x1xf32> -> vector<1x1xf32>
    %56 = vector.broadcast %55 : vector<1x1xf32> to vector<1x4xf32>
    %57 = arith.mulf %52, %56 : vector<1x4xf32>
    %58 = vector.shape_cast %57 : vector<1x4xf32> to vector<1x1x4xf32>
    %c0_16 = arith.constant 0 : index
    %c0_17 = arith.constant 0 : index
    %c0_18 = arith.constant 0 : index
    %59 = vector.load %arg7[%c0_16, %c0_17, %c0_18] : memref<1x1x4xf32, #tpu.memory_space<vmem>>, vector<1x1x4xf32>
    tpu.vector_store %arg7[%c0_16, %c0_17, %c0_18], %58 {strides = array<i32>} : memref<1x1x4xf32, #tpu.memory_space<vmem>>, vector<1x1x4xf32>,
    %60 = vector.shape_cast %57 : vector<1x4xf32> to vector<1x4x1xf32>
    %c0_19 = arith.constant 0 : index
    %c0_20 = arith.constant 0 : index
    %c0_21 = arith.constant 0 : index
    %61 = vector.load %arg1[%c0_19, %c0_20, %c0_21] : memref<1x4x256xf32, #tpu.memory_space<vmem>>, vector<1x4x256xf32>
    %62 = vector.broadcast %60 : vector<1x4x1xf32> to vector<1x4x256xf32>
    %63 = arith.mulf %61, %62 : vector<1x4x256xf32>
    %c0_22 = arith.constant 0 : index
    %c0_23 = arith.constant 0 : index
    %c0_24 = arith.constant 0 : index
    %64 = vector.load %arg6[%c0_22, %c0_23, %c0_24] : memref<1x4x256xf32, #tpu.memory_space<vmem>>, vector<1x4x256xf32>
    tpu.vector_store %arg6[%c0_22, %c0_23, %c0_24], %63 {strides = array<i32>} : memref<1x4x256xf32, #tpu.memory_space<vmem>>, vector<1x4x256xf32>,
    return
  }
  func.func @transform_0(%arg0: i32) -> (i32, i32, i32) {
    %c0_i32 = arith.constant 0 : i32
    %c0_i32_0 = arith.constant 0 : i32
    %c0_i32_1 = arith.constant 0 : i32
    return %arg0, %c0_i32, %c0_i32_0 : i32, i32, i32
  }
  func.func @transform_1(%arg0: i32) -> (i32, i32) {
    %c0_i32 = arith.constant 0 : i32
    %c0_i32_0 = arith.constant 0 : i32
    %c0_i32_1 = arith.constant 0 : i32
    return %c0_i32, %c0_i32_0 : i32, i32
  }
  func.func @transform_2(%arg0: i32) -> (i32, i32) {
    %c0_i32 = arith.constant 0 : i32
    %c0_i32_0 = arith.constant 0 : i32
    %c0_i32_1 = arith.constant 0 : i32
    return %c0_i32, %c0_i32_0 : i32, i32
  }
  func.func @transform_3(%arg0: i32) -> (i32, i32) {
    %c0_i32 = arith.constant 0 : i32
    %c0_i32_0 = arith.constant 0 : i32
    %c0_i32_1 = arith.constant 0 : i32
    return %c0_i32, %c0_i32_0 : i32, i32
  }
  func.func @transform_4(%arg0: i32) -> (i32, i32) {
    %c0_i32 = arith.constant 0 : i32
    %c0_i32_0 = arith.constant 0 : i32
    %c0_i32_1 = arith.constant 0 : i32
    return %c0_i32, %c0_i32_0 : i32, i32
  }
  func.func @transform_5(%arg0: i32) -> (i32, i32, i32) {
    %c0_i32 = arith.constant 0 : i32
    %c0_i32_0 = arith.constant 0 : i32
    %c0_i32_1 = arith.constant 0 : i32
    return %arg0, %c0_i32, %c0_i32_0 : i32, i32, i32
  }
  func.func @transform_6(%arg0: i32) -> (i32, i32, i32) {
    %c0_i32 = arith.constant 0 : i32
    %c0_i32_0 = arith.constant 0 : i32
    %c0_i32_1 = arith.constant 0 : i32
    return %arg0, %c0_i32, %c0_i32_0 : i32, i32, i32
  }
}

</mosaic_0001>

<bundles_post_ra>
// kernel: tpu_custom_call.1
= control target key start
LH: loop header
LB: loop body
LE: loop exit
PB: predicated region body
PF: predicated region fallthrough
CT: control target
= control target key end

     0   :  { %12 = vsyncpa [#allocation3], 0  ;;  %s934_s0 = inlined_call_operand.vmem [shape: f32[2,4,256], index: 0, kind: input, shape index: {}]   ;;  %s935_s1 = inlined_call_operand.vmem [shape: f32[8,4], index: 1, kind: input, shape index: {}]   ;;  %s936_s2 = inlined_call_operand.vmem [shape: f32[8,1], index: 2, kind: input, shape index: {}]   ;;  %s937_s3 = inlined_call_operand.vmem [shape: f32[8,4], index: 3, kind: input, shape index: {}]   ;;  %s938_s4 = inlined_call_operand.vmem [shape: f32[1,4], index: 4, kind: input, shape index: {}]   ;;  %s939_s5 = inlined_call_operand.hbm [shape: f32[2,4,256], index: 5, kind: output, shape index: {0}]   ;;  %s940_s6 = inlined_call_operand.hbm [shape: f32[2,1,4], index: 6, kind: output, shape index: {1}]  }
   0x1   :  { %14 = vsyncpa [#allocation3 + $0x1], 0 }
   0x2   :  { %15 = vsyncpa [#allocation5], 0 }
   0x3   :  { %17 = vsyncpa [#allocation5 + $0x1], 0  ;;  %s756_s21 = smov 0   ;;  %s758_s22 = smov 0  }
   0x4   :  { %s760_s23 = smov 0   ;;  %s762_s24 = smov 0  }
   0x5 LB: > { %s777_s25 = sadd.s32 4294967295, %s712_s24   ;;  %s544_s26 = sadd.s32 4294967294, %s712_s24   ;;  %s712_s24 = sphi %s762_s24, %s946_s24   ;;  %s708_s23 = sphi %s760_s23, %s945_s23   ;;  %s704_s22 = sphi %s758_s22, %s944_s22   ;;  %s700_s21 = sphi %s756_s21, %s943_s21  }
   0x6   : > { %s781_s27 = sadd.s32 1, %s712_s24   ;;  %s140_s28 = sadd.s32 1, %s708_s23 }
   0x7   : > { %s137_s29 = ssub.s32 %s712_s24, %s781_s27  ;;  %p150_p0 = scmp.ne.s32.totalorder %s708_s23, %s704_s22 }
   0x8   : > { %p138_p1 = scmp.eq.s32.totalorder %s137_s29, 0  ;;  %p151_p2 = scmp.eq.s32.totalorder %s777_s25, 1 }
   0x9   : > { %p156_p3 = scmp.ne.s32.totalorder %s704_s22, %s700_s21  ;;  %p157_p4 = scmp.eq.s32.totalorder %s544_s26, 1 }
   0xa   : > { %s792_s30 = scalar_select %p138_p1, %s708_s23, %s140_s28  }
   0xb   : > { %p794_p5 = por %p151_p2, %p150_p0  ;;  %p798_p6 = por %p157_p4, %p156_p3 }
   0xc   : > { %p547_p7 = scmp.ge.s32.totalorder %s712_s24, 1  ;;  %p221_p8 = scmp.lt.s32.totalorder %s712_s24, 3 }
   0xe   : > { %p222_p9 = pnand %p547_p7, %p221_p8 }
   0xf   : > { %v260_v0 = vld [vmem:[%s935_s1] sm:$0xff] (!%p222_p9)  ;;  %v714_v1 = vmov (!%p222_p9), 0   ;;  %v715_v2 = vmov (!%p222_p9), 2   ;;  %v716_v3 = vmov (!%p222_p9), 1   ;;  %v717_v4 = vmov (!%p222_p9), 3   ;;  %p255_p10 = scmp.lt.s32.totalorder (!%p222_p9), %s777_s25, 1 }
  0x10   : > { %225 = sbr.rel (%p222_p9) target bundleno = 785 (0x311), region = 40  ;;  %608 = vset.pattern.permute.xlu0 (!%p222_p9), %v714_v1  ;;  %610 = vset.pattern.permute.xlu1 (!%p222_p9), %v715_v2  ;;  %v261_v5 = vld [vmem:[%s936_s2] sm:$0xff] (!%p222_p9)  ;;  %v269_v6 = vlaneseq (!%p222_p9)  ;;  %vm384_vm0 = vcmask (!%p222_p9), 31744   ;;  %vm393_vm1 = vcmask (!%p222_p9), 24576   ;;  %s849_s28 = sand.u32 (!%p222_p9), 1, %s704_s22  }
  0x11   : > { %265 = vperm.xlu0 (!%p222_p9), %608, %v260_v0   ;;  %316 = vperm.xlu1 (!%p222_p9), %610, %v260_v0   ;;  %v381_v57 = vld [vmem:[%s937_s3] sm:$0xff] (!%p222_p9)  ;;  %s554_s29 = sshll.u32 (!%p222_p9), %s777_s25, 4  ;;  %s254_s9 = scalar_lea.vmem (!%p222_p9), [#allocation4], %s849_s28 }
  0x12   : > { %v812_v7 = vshrl.u32 (!%p222_p9), %v269_v6, 7  ;;  %s457_s10 = sshll.u32 (!%p222_p9), %s254_s9, 4  ;;  %s718_s16 = smov (!%p222_p9), [#allocation4]   ;;  %s858_s10 = int_to_ptr.vmem [resolvable:$true] %s457_s10 }
  0x13   : > { %s618_s15 = scalar_lea.vmem (!%p222_p9), %s858_s10, 16 }
  0x14   : > { %v818_v8 = vsub.s32 (!%p222_p9), 0, %v812_v7  ;;  %v275_v9 = vsub.s32 (!%p222_p9), 4, %v812_v7  ;;  %v295_v10 = vsub.s32 (!%p222_p9), 1, %v812_v7  ;;  %v299_v11 = vsub.s32 (!%p222_p9), 5, %v812_v7  ;;  %p619_p11 = scmp.ne.s32.totalorder (!%p222_p9), %s858_s10, %s618_s15 }
  0x15   : > { %609 = vset.pattern.permute.xlu0 (!%p222_p9), %v716_v3  ;;  %611 = vset.pattern.permute.xlu1 (!%p222_p9), %v717_v4  ;;  %v321_v13 = vsub.s32 (!%p222_p9), 2, %v812_v7  ;;  %v325_v14 = vsub.s32 (!%p222_p9), 6, %v812_v7  ;;  %v347_v15 = vsub.s32 (!%p222_p9), 3, %v812_v7  ;;  %v351_v16 = vsub.s32 (!%p222_p9), 7, %v812_v7  ;;  %v382_v3 = vld [vmem:[%s938_s4] sm:$0x1] (!%p222_p9) }
  0x16   : > { %290 = vperm.xlu0 (!%p222_p9), %609, %v260_v0   ;;  %342 = vperm.xlu1 (!%p222_p9), %611, %v260_v0   ;;  %p620_p12 = pnand (!%p222_p9), %p619_p11, %p794_p5 }
  0x17   : > { %s256_s13 = scalar_select %p255_p10, %s777_s25, 1 }
  0x18   : > { %p621_p13 = pneg %p620_p12 }
  0x19   : > { %s557_s14 = sshll.u32 %s256_s13, 3  ;;  %s856_s13 = scalar_lea.hbm %s940_s6, %s554_s29 }
  0x1a   : > { %612 = vset.pattern.permute.xlu1 %v714_v1  ;;  %613 = vset.pattern.permute.xlu0 %v714_v1  ;;  %s259_s17 = scalar_lea.vmem %s934_s0, %s557_s14  ;;  %s431_s14 = scalar_lea.sflag [#allocation5], %s849_s28 }
  0x1b   : > { %369 = vperm.xlu1 %612, %v261_v5   ;;  %v823_v12 = vld [vmem:[%s259_s17] sm:$0xff]  ;;  %s622_s17 = sshll.u32 %s718_s16, 4  ;;  %s623_s17 = int_to_ptr.vmem [resolvable:$false] %s622_s17 }
  0x1c   : > { %v272_v17 = vrot.slane %v823_v12, %v818_v8  ;;  %v276_v18 = vrot.slane %v823_v12, %v275_v9  ;;  %v296_v19 = vrot.slane %v823_v12, %v295_v10  ;;  %v300_v20 = vrot.slane %v823_v12, %v299_v11  ;;  %s624_s18 = scalar_lea.vmem %s623_s17, 32  ;;  %p625_p0 = scmp.lt.s32.totalorder %s858_s10, %s623_s17 }
  0x1d   : > { %v322_v21 = vrot.slane %v823_v12, %v321_v13  ;;  %v326_v22 = vrot.slane %v823_v12, %v325_v14  ;;  %v348_v25 = vrot.slane %v823_v12, %v347_v15  ;;  %v352_v26 = vrot.slane %v823_v12, %v351_v16  ;;  %p626_p1 = scmp.lt.s32.totalorder %s624_s18, %s618_s15 }
  0x1e   : > { %v282_v27 = vrot.slane %v272_v17, %v818_v8  ;;  %v286_v28 = vrot.slane %v276_v18, %v818_v8  ;;  %v306_v29 = vrot.slane %v296_v19, %v295_v10  ;;  %v310_v30 = vrot.slane %v300_v20, %v295_v10 }
  0x1f   : > { %v332_v31 = vrot.slane %v322_v21, %v321_v13  ;;  %v336_v32 = vrot.slane %v326_v22, %v321_v13  ;;  %v358_v33 = vrot.slane %v348_v25, %v347_v15  ;;  %v362_v34 = vrot.slane %v352_v26, %v347_v15  ;;  %p627_p2 = por %p626_p1, %p625_p0 }
  0x21   : > { %p628_p3 = pnand %p627_p2, %p621_p13 }
  0x90   : > { %v266_v23 = vpop.permute.xlu0 %265  ;;  %v317_v24 = vpop.permute.xlu1 %316 }
  0x91   : > { %v287_v37 = vmul.f32 %v282_v27, %v266_v23  ;;  %v288_v38 = vmul.f32 %v286_v28, %v266_v23  ;;  %v337_v41 = vmul.f32 %v332_v31, %v317_v24  ;;  %v338_v42 = vmul.f32 %v336_v32, %v317_v24 }
  0x95   : > { %v291_v35 = vpop.permute.xlu0 %290  ;;  %v343_v36 = vpop.permute.xlu1 %342 }
  0x96   : > { %v311_v39 = vmul.f32 %v306_v29, %v291_v35  ;;  %v312_v40 = vmul.f32 %v310_v30, %v291_v35  ;;  %v363_v45 = vmul.f32 %v358_v33, %v343_v36  ;;  %v364_v46 = vmul.f32 %v362_v34, %v343_v36 }
  0x98   : > { %v313_v43 = vadd.f32 %v311_v39, %v287_v37  ;;  %v314_v44 = vadd.f32 %v312_v40, %v288_v38 }
  0x9a   : > { %v339_v47 = vadd.f32 %v337_v41, %v313_v43  ;;  %v340_v48 = vadd.f32 %v338_v42, %v314_v44  ;;  %v370_v49 = vpop.permute.xlu1 %369 }
  0x9c   : > { %v365_v50 = vadd.f32 %v363_v45, %v339_v47  ;;  %v366_v51 = vadd.f32 %v364_v46, %v340_v48 }
  0x9e   : > { %v372_v52 = vadd.f32 %v370_v49, %v365_v50  ;;  %v373_v53 = vadd.f32 %v370_v49, %v366_v51 }
  0xa0   : > { %v374_v54 = vmax.f32 %v372_v52, 0.0  ;;  %v375_v55 = vmax.f32 %v373_v53, 0.0 }
  0xa2   : > { %v376_v56 = vadd.f32 %v375_v55, %v374_v54 }
  0xa4   : > { %377 = vadd.xlane.f32.xlu0 %v376_v56 }
 0x131   : > { %v378_v58 = vpop.xlane.xlu0 %377 }
 0x132   : > { %v380_v59 = vmul.f32 0.00390625, %v378_v58 }
 0x134   : > { %v383_v60 = vmul.f32 %v381_v57, %v380_v59 }
 0x136   : > { %v385_v61 = vsel %vm384_vm0, %v383_v60, 0.0 }
 0x137   : > { %v386_v62 = vrot.slane %v385_v61, 4 }
 0x139   : > { %v387_v63 = vadd.f32 %v386_v62, %v385_v61 }
 0x13b   : > { %v388_v0 = vrot.slane %v387_v63, 2 }
 0x13d   : > { %v389_v1 = vadd.f32 %v388_v0, %v387_v63 }
 0x13f   : > { %v390_v2 = vrot.slane %v389_v1, 1 }
 0x141   : > { %v391_v4 = vadd.f32 %v390_v2, %v389_v1 }
 0x143   : > { %v392_v5 = vadd.f32 %v391_v4, %v382_v3 }
 0x145   : > { %v394_v6 = vsel %vm393_vm1, %v392_v5, -inf }
 0x146   : > { %395 = vmax.xlane.f32.xlu1 %v394_v6 }
 0x1d3   : > { %v396_v9 = vpop.xlane.xlu1 %395 }
 0x1d4   : > { %v397_v10 = vsub.f32 %v392_v5, %v396_v9 }
 0x1d6   : > { %v398_v11 = vmul.f32 1.442695, %v397_v10 }
 0x1d8   : > { %614 = vpow2.f32 %v398_v11 }
 0x1e2   : > { %v615_v13 = vpop.eup %614 }
 0x1e3   : > { %v400_v14 = vsel %vm393_vm1, %v615_v13, 0.0 }
 0x1e4   : > { %401 = vadd.xlane.f32.xlu0 %v400_v14 }
 0x271   : > { %v402_v15 = vpop.xlane.xlu0 %401 }
 0x272   : > { %616 = vrcp.f32 %v402_v15 }
 0x27c   : > { %v617_v16 = vpop.eup %616 }
 0x27d   : > { %v404_v17 = vmul.f32 %v617_v16, %v615_v13 }
 0x27f   : > { %v409_v18 = vrot.slane %v404_v17, %v818_v8  ;;  %405 = vst.msk [vmem:[%s254_s9] sm:$0x1] %vm393_vm1, %v404_v17 }
 0x280   : > { %631 = shalt.err (!%p628_p3)
}
 0x281   : > { %s632_s19 = scalar_lea.hbm %s856_s13, 16  ;;  %s636_s29 = scalar_lea.hbm %s940_s6, 32 }
 0x282   : > { %p633_p4 = scmp.ne.s32.totalorder %s856_s13, %s632_s19  ;;  %p637_p9 = scmp.lt.u32.totalorder %s856_s13, %s940_s6 }
 0x283   : > { %p638_p10 = scmp.lt.u32.totalorder %s636_s29, %s632_s19  ;;  %p640_p12 = scmp.lt.u32.totalorder %s632_s19, %s856_s13 }
 0x284   : > { %p634_p7 = pnand %p633_p4, %p794_p5 }
 0x285   : > { %p639_p11 = por %p638_p10, %p637_p9 }
 0x286   : > { %p635_p8 = pneg %p634_p7 }
 0x287   : > { %p641_p13 = por %p640_p12, %p639_p11 }
 0x289   : > { %p642_p0 = pnand %p641_p13, %p635_p8 }
 0x28b   : > { %645 = shalt.err (!%p642_p0)
}
 0x28c   : > { %560 = dma.vmem_to_hbm [thread:$0]  (%p794_p5), %s858_s10, 16, %s856_s13, %s431_s14   ;;  %411 = vbcast.lane.b32.xlu0 %v409_v18, 256  ;;  %v719_v8 = vmov 839922192  }
 0x28d   : > { %v416_v19 = vunpack.c.l.s4 %v719_v8  ;;  %s548_s12 = sshll.u32 %s849_s28, 3  ;;  %s558_s15 = sshll.u32 %s777_s25, 7 }
 0x28e   : > { %s248_s16 = scalar_lea.vmem [#allocation2], %s548_s12  ;;  %s891_s10 = scalar_lea.hbm %s939_s5, %s558_s15 }
 0x28f   : > { %v417_v20 = vunpack.c.0.s8 %v416_v19  ;;  %s444_s17 = sshll.u32 %s248_s16, 4  ;;  %s426_s13 = scalar_lea.sflag [#allocation3], %s849_s28  ;;  %s893_s17 = int_to_ptr.vmem [resolvable:$true] %s444_s17 }
 0x290   : > { %s646_s14 = scalar_lea.vmem %s893_s17, 128  ;;  %s720_s25 = smov [#allocation2]  }
 0x291   : > { %v420_v21 = vsub.s32 %v417_v20, %v812_v7  ;;  %p647_p1 = scmp.ne.s32.totalorder %s893_s17, %s646_s14  ;;  %s650_s20 = sshll.u32 %s720_s25, 4  ;;  %s651_s20 = int_to_ptr.vmem [resolvable:$false] %s650_s20 }
 0x292   : > { %s652_s26 = scalar_lea.vmem %s651_s20, 256  ;;  %p653_p4 = scmp.lt.s32.totalorder %s893_s17, %s651_s20 }
 0x293   : > { %p648_p2 = pnand %p647_p1, %p794_p5  ;;  %p654_p7 = scmp.lt.s32.totalorder %s652_s26, %s646_s14 }
 0x295   : > { %p649_p3 = pneg %p648_p2  ;;  %p655_p8 = por %p654_p7, %p653_p4 }
 0x297   : > { %p656_p9 = pnand %p655_p8, %p649_p3 }
 0x2fe   : > { %v412_v22 = vpop.permute.xlu0 %411 }
 0x2ff   : > { %v421_v23 = vrot.slane %v412_v22, %v420_v21 }
 0x301   : > { %v423_v24 = vmul.f32 %v421_v23, %v823_v12 }
 0x303   : > { %424 = vst [vmem:[%s248_s16] sm:$0xff] %v423_v24 }
 0x304   : > { %659 = shalt.err (!%p656_p9)
}
 0x305   : > { %s660_s28 = scalar_lea.hbm %s891_s10, 128  ;;  %s664_s11 = scalar_lea.hbm %s939_s5, 256 }
 0x306   : > { %p661_p10 = scmp.ne.s32.totalorder %s891_s10, %s660_s28  ;;  %p665_p13 = scmp.lt.u32.totalorder %s891_s10, %s939_s5 }
 0x307   : > { %p666_p0 = scmp.lt.u32.totalorder %s664_s11, %s660_s28  ;;  %p668_p2 = scmp.lt.u32.totalorder %s660_s28, %s891_s10 }
 0x308   : > { %p662_p11 = pnand %p661_p10, %p794_p5 }
 0x309   : > { %p667_p1 = por %p666_p0, %p665_p13 }
 0x30a   : > { %p663_p12 = pneg %p662_p11 }
 0x30b   : > { %p669_p3 = por %p668_p2, %p667_p1 }
 0x30d   : > { %p670_p4 = pnand %p669_p3, %p663_p12 }
 0x30f   : > { %673 = shalt.err (!%p670_p4)
}
 0x310   : > { %559 = dma.vmem_to_hbm [thread:$0]  (%p794_p5), %s893_s17, 128, %s891_s10, %s426_s13  }
 0x311 PF: > { %p570_p7 = scmp.ge.s32.totalorder %s712_s24, 2  ;;  %s469_s16 = sand.u32 1, %s700_s21  }
 0x312   : > { %s470_s18 = scalar_lea.sflag [#allocation3], %s469_s16 }
 0x313   : > { %p564_p8 = pnand %p570_p7, %p798_p6 }
 0x315   : > { %691 = dma.done.wait (!%p564_p8), %s470_s18, 128  }
 0x316   : > { %693 = vsyncadd (!%p564_p8), %s470_s18, 4294967168  ;;  %s479_s19 = scalar_lea.sflag [#allocation5], %s469_s16 }
 0x317   : > { %695 = dma.done.wait (!%p564_p8), %s479_s19, 16  }
 0x318   : > { %697 = vsyncadd (!%p564_p8), %s479_s19, 4294967280  ;;  %p20_p5 = scmp.ge.s32.totalorder %s781_s27, 4   ;;  %s943_s21 = smov %s704_s22 }
 0x319   : > { %s944_s22 = smov %s708_s23  ;;  %s945_s23 = smov %s792_s30 }
 0x31a   : > { %s946_s24 = smov %s781_s27  ;;  %22 = sbr.rel (!%p20_p5) target bundleno = 5 (0x5), region = 92 }
 0x321   :  { %483 = vsyncpa [#allocation3], 1 }
 0x322   :  { %485 = vsyncpa [#allocation3 + $0x1], 1 }
 0x323   :  { %486 = vsyncpa [#allocation5], 1 }
 0x324   :  { %488 = vsyncpa [#allocation5 + $0x1], 1 }

</bundles_post_ra>
